<compile_context>
chip_gen: v7x
topology: tpu7x:2x2x1
jax: 0.10.0
libtpu: 0.0.40
codegen_flags: <defaults>
</compile_context>

<pallas_src>
import functools

import jax
import jax.numpy as jnp
from jax.experimental import pallas as pl
from jax.experimental.pallas import tpu as pltpu


# ---------------------------------------------------------------------------
# Parameter construction (matches LearnableFourier1D.__init__ semantics)
# ---------------------------------------------------------------------------
def fourier1d_weight(n, inverse=False, learnable=True, key=None):
    """Build the (2n, 2n) real-valued block matrix [[Re, -Im], [Im, Re]]."""
    eye_c = jnp.eye(n, dtype=jnp.complex64)
    if inverse:
        F = jnp.fft.ifft(jnp.fft.ifftshift(eye_c, axes=-1), axis=-2, norm="ortho")
    else:
        F = jnp.fft.fftshift(jnp.fft.fft(eye_c, axis=-1, norm="ortho"), axes=-2)
    Fr = jnp.real(F).astype(jnp.float32)
    Fi = jnp.imag(F).astype(jnp.float32)
    W = jnp.concatenate(
        [jnp.concatenate([Fr, -Fi], axis=1), jnp.concatenate([Fi, Fr], axis=1)],
        axis=0,
    )
    if learnable:
        assert key is not None
        noise = jax.random.normal(key, W.shape, dtype=jnp.float32)
        W = W + (1.0 / (jnp.sqrt(jnp.float32(n)) * 16.0)) * noise
    return W


# ---------------------------------------------------------------------------
# Pure-JAX reference (mirrors the PyTorch forward exactly).  Also used once on
# the host to build the fused 2-D operator for the lane-dense combined path.
# ---------------------------------------------------------------------------
def ref_forward(x, W1, W2):
    B, _, n1, n2 = x.shape
    # linear2: dim = -1
    xv = jnp.concatenate([x[:, 0], x[:, 1]], axis=-1)        # (B, n1, 2*n2)
    y = xv @ W2.T
    x2 = jnp.stack([y[..., :n2], y[..., n2:]], axis=1)       # (B, 2, n1, n2)
    # linear1: dim = -2
    xt = jnp.swapaxes(x2, -1, -2)                            # (B, 2, n2, n1)
    xv1 = jnp.concatenate([xt[:, 0], xt[:, 1]], axis=-1)     # (B, n2, 2*n1)
    z = xv1 @ W1.T
    out = jnp.stack([z[..., :n1], z[..., n1:]], axis=1)      # (B, 2, n2, n1)
    return jnp.swapaxes(out, -1, -2)                         # (B, 2, n1, n2)


# ---------------------------------------------------------------------------
# Chip-aware defaults and VMEM-aware block sizing
# ---------------------------------------------------------------------------
def _chip_defaults():
    """Returns (vmem_limit_bytes_or_None, block_budget_bytes, min_grid, bf16_ok)."""
    try:
        kind = jax.devices()[0].device_kind.lower()
    except Exception:
        kind = ""
    if "v7" in kind:   # 64 MiB VMEM / TensorCore, 2 TCs -> want >= 2 steps per core
        return 48 << 20, 40 << 20, 4, True
    if "v6" in kind:   # 128 MiB VMEM
        return 96 << 20, 80 << 20, 2, True
    if "v5" in kind:   # v5e/v5p: 128 MiB VMEM, no bf16 VPU -> keep f32 default
        return 96 << 20, 80 << 20, 2, False
    if "v4" in kind:
        return 64 << 20, 56 << 20, 2, False
    # v2 / v3 / unknown: small scoped VMEM; keep the compiler's default limit.
    return None, 10 << 20, 2, False


def _rup(x, m):
    return ((x + m - 1) // m) * m


def _combined_footprint(tb, D, cd_bytes):
    """Approx VMEM bytes for one grid step of the combined path (lane padded)."""
    tb8 = _rup(tb, 8)
    Dl = _rup(D, 128)
    Ds = _rup(D, 8)
    io_blocks = 2 * 2 * tb8 * Dl * 4            # input + output, double-buffered (f32)
    weights = 2 * Ds * Dl * cd_bytes            # (D, D) operator, 2 pipeline buffers
    inter = tb8 * Dl * (cd_bytes + 4)           # cast input + f32 matmul result
    return io_blocks + weights + inter


def _separable_footprint(tb, n1, n2, cd_bytes):
    """Approx VMEM bytes for one grid step of the separable path (lane padded)."""
    n1s, n2s = _rup(n1, 8), _rup(n2, 8)
    n1l, n2l = _rup(n1, 128), _rup(n2, 128)
    blk = tb * 2 * n1s * n2l * 4
    io_blocks = 2 * 2 * blk                                      # in + out, double-buffered
    w2 = 2 * _rup(2 * n2, 8) * _rup(2 * n2, 128) * cd_bytes
    w1 = 2 * _rup(2 * n1, 8) * _rup(2 * n1, 128) * cd_bytes
    inter = tb * (
        n1s * _rup(2 * n2, 128) * (cd_bytes + 4)    # xv (cd) + y (f32)
        + 2 * n2s * n1l * 4                         # yr_t, yi_t relayout (f32)
        + n2s * _rup(2 * n1, 128) * (cd_bytes + 4)  # yv (cd) + z (f32)
        + 2 * n1s * n2l * 4                         # zr, zi (f32)
    )
    return io_blocks + w1 + w2 + inter


def _pick_block_b(B, footprint_fn, budget, *, align=1, min_grid=2, requested=None):
    """Largest divisor of B that fits the VMEM budget, prefers >= min_grid steps.

    `align` enforces sublane alignment when the batch block is the second-minor
    dim of the kernel block (lane-dense combined path).  Returns None if no
    aligned divisor fits (caller falls back).
    """
    if requested is not None:
        if B % requested != 0:
            raise ValueError(f"block_b={requested} must divide B={B}")
        return requested
    divisors = [d for d in range(B, 0, -1) if B % d == 0]
    cands = [d for d in divisors
             if (d == B or d % align == 0) and footprint_fn(d) <= budget]
    if not cands:
        return None
    for g in range(min_grid, 0, -1):              # largest achievable grid length
        pref = [d for d in cands if B // d >= g]
        if pref:
            return pref[0]                        # biggest tile meeting that grid length
    return cands[0]


# ---------------------------------------------------------------------------
# Kernel bodies
# ---------------------------------------------------------------------------
def _combined_kernel(x_ref, w_ref, o_ref, *, compute_dtype):
    # Fully lane-dense: x block is (TB, D) with D = 2*n1*n2 on the lane axis.
    x = x_ref[...].astype(compute_dtype)
    o_ref[...] = jnp.dot(
        x, w_ref[...], preferred_element_type=jnp.float32
    ).astype(o_ref.dtype)


def _separable_kernel(x_ref, w2t_ref, w1t_ref, o_ref, *, n1, n2, compute_dtype):
    tb = x_ref.shape[0]
    f32 = jnp.float32

    # Fold the batch block into the matmul M dimension.  (Leading-dim reshapes
    # are layout-preserving when n1/n2 are multiples of 8; otherwise this is a
    # perf-only in-VMEM relayout, never a correctness issue.)
    xr = x_ref[:, 0, :, :].reshape(tb * n1, n2)
    xi = x_ref[:, 1, :, :].reshape(tb * n1, n2)
    xv = jnp.concatenate([xr, xi], axis=-1).astype(compute_dtype)   # (tb*n1, 2*n2)

    # ---- step A: linear2 along dim=-1 with the full (2n2, 2n2) weight -------
    y = jnp.dot(xv, w2t_ref[...], preferred_element_type=f32)       # (tb*n1, 2*n2)
    yr, yi = y[:, :n2], y[:, n2:]

    # ---- relayout between the two separable 1-D transforms (in-VMEM XLU) ----
    yr_t = jnp.swapaxes(yr.reshape(tb, n1, n2), -1, -2).reshape(tb * n2, n1)
    yi_t = jnp.swapaxes(yi.reshape(tb, n1, n2), -1, -2).reshape(tb * n2, n1)
    yv = jnp.concatenate([yr_t, yi_t], axis=-1).astype(compute_dtype)  # (tb*n2, 2*n1)

    # ---- step B: linear1 along dim=-2, computed in transposed form ----------
    z = jnp.dot(yv, w1t_ref[...], preferred_element_type=f32)       # (tb*n2, 2*n1)
    zr = jnp.swapaxes(z[:, :n1].reshape(tb, n2, n1), -1, -2)
    zi = jnp.swapaxes(z[:, n1:].reshape(tb, n2, n1), -1, -2)
    o_ref[:, 0, :, :] = zr.astype(o_ref.dtype)
    o_ref[:, 1, :, :] = zi.astype(o_ref.dtype)


# ---------------------------------------------------------------------------
# pallas_call runners
# ---------------------------------------------------------------------------
def _run_combined(x, W1, W2, tb, compute_dtype, vmem_limit):
    B, _, n1, n2 = x.shape
    D = 2 * n1 * n2
    cdb = jnp.dtype(compute_dtype).itemsize

    # Host-side (plain JAX, once): fused 2-D operator in transposed form.
    # Rows of R are forward(e_j), so out_flat = x_flat @ R.
    basis = jnp.eye(D, dtype=jnp.float32).reshape(D, 2, n1, n2)
    R = ref_forward(basis, W1, W2).reshape(D, D).astype(compute_dtype)

    x2 = x.reshape(B, D)                         # contiguous -> free reshape
    grid = (B // tb,)
    cost = pl.CostEstimate(
        flops=int(2 * B * D * D),
        transcendentals=0,
        bytes_accessed=int(2 * B * D * 4 + D * D * cdb),
    )
    out = pl.pallas_call(
        functools.partial(_combined_kernel, compute_dtype=compute_dtype),
        out_shape=jax.ShapeDtypeStruct((B, D), x.dtype),
        grid_spec=pltpu.PrefetchScalarGridSpec(
            num_scalar_prefetch=0,
            grid=grid,
            in_specs=[
                pl.BlockSpec((tb, D), lambda b: (b, 0)),
                pl.BlockSpec((D, D), lambda b: (0, 0)),     # constant -> DMA'd once
            ],
            out_specs=pl.BlockSpec((tb, D), lambda b: (b, 0)),
        ),
        compiler_params=pltpu.CompilerParams(
            dimension_semantics=("parallel",),
            vmem_limit_bytes=vmem_limit,
        ),
        cost_estimate=cost,
    )(x2, R)
    return out.reshape(B, 2, n1, n2)


def _run_separable(x, W1, W2, tb, compute_dtype, vmem_limit):
    B, _, n1, n2 = x.shape
    cdb = jnp.dtype(compute_dtype).itemsize

    # Host-side weight prep (once): transposed full weights in compute dtype.
    w2t = W2.T.astype(compute_dtype)             # (2*n2, 2*n2)
    w1t = W1.T.astype(compute_dtype)             # (2*n1, 2*n1)

    grid = (B // tb,)
    cost = pl.CostEstimate(
        flops=int(8 * B * n1 * n2 * (n1 + n2)),
        transcendentals=0,
        bytes_accessed=int(2 * B * 2 * n1 * n2 * 4
                           + ((2 * n1) ** 2 + (2 * n2) ** 2) * cdb),
    )
    return pl.pallas_call(
        functools.partial(_separable_kernel, n1=n1, n2=n2, compute_dtype=compute_dtype),
        out_shape=jax.ShapeDtypeStruct((B, 2, n1, n2), x.dtype),
        grid_spec=pltpu.PrefetchScalarGridSpec(
            num_scalar_prefetch=0,
            grid=grid,
            in_specs=[
                pl.BlockSpec((tb, 2, n1, n2), lambda b: (b, 0, 0, 0)),
                pl.BlockSpec((2 * n2, 2 * n2), lambda b: (0, 0)),   # constant -> once
                pl.BlockSpec((2 * n1, 2 * n1), lambda b: (0, 0)),   # constant -> once
            ],
            out_specs=pl.BlockSpec((tb, 2, n1, n2), lambda b: (b, 0, 0, 0)),
        ),
        compiler_params=pltpu.CompilerParams(
            dimension_semantics=("parallel",),
            vmem_limit_bytes=vmem_limit,
        ),
        cost_estimate=cost,
    )(x, w2t, w1t)


# ---------------------------------------------------------------------------
# Public wrapper
# ---------------------------------------------------------------------------
def learnable_fourier2d(x, W1, W2, *, block_b=None, compute_dtype=None,
                        combined_threshold=2048):
    """LearnableFourier2D forward.

    x: (B, 2, n1, n2) float32;  W1: (2*n1, 2*n1);  W2: (2*n2, 2*n2).
    compute_dtype: None -> auto (bf16 on v6e/v7x with f32 accumulation, f32 on
    v5e and older).  bf16 rounds the intermediate between the two 1-D
    transforms; use f32 when bit-level agreement with the reference matters.
    """
    B, two, n1, n2 = x.shape
    assert two == 2
    assert W1.shape == (2 * n1, 2 * n1)
    assert W2.shape == (2 * n2, 2 * n2)

    vmem_limit, budget, min_grid, bf16_ok = _chip_defaults()
    cd = compute_dtype if compute_dtype is not None else (
        jnp.bfloat16 if bf16_ok else jnp.float32)
    cdb = jnp.dtype(cd).itemsize

    D = 2 * n1 * n2
    # Small-n regime: fused lane-dense operator (one matmul, no relayouts,
    # no masked partial stores).  Needs sublane-aligned batch blocks.
    if D <= combined_threshold and (block_b is None or block_b % 8 == 0 or block_b == B):
        tb = _pick_block_b(B, lambda d: _combined_footprint(d, D, cdb), budget,
                           align=8, min_grid=min_grid, requested=block_b)
        if tb is not None:
            return _run_combined(x, W1, W2, tb, cd, vmem_limit)

    # Separable path (large n): two full-weight matmuls per step.
    tb = _pick_block_b(B, lambda d: _separable_footprint(d, n1, n2, cdb), budget,
                       align=1, min_grid=min_grid, requested=block_b)
    if tb is None:
        # TODO(synk): for very large n1*n2 (TB=1 still over ~48 MiB on v7x), add a
        # second 'arbitrary' grid axis over n1 with a VMEM accumulator instead.
        tb = 1
    return _run_separable(x, W1, W2, tb, cd, vmem_limit)


# ---------------------------------------------------------------------------
# Self-test
# ---------------------------------------------------------------------------
if __name__ == "__main__":
    B, n1, n2 = 16, 16, 16

    key = jax.random.PRNGKey(0)
    kx, kw1, kw2 = jax.random.split(key, 3)

    # LearnableFourier2D(n=(n1, n2), inverse=False, learnable=True):
    # DFT-initialized weights plus small deterministic noise.
    W1 = fourier1d_weight(n1, inverse=False, learnable=True, key=kw1)   # (32, 32)
    W2 = fourier1d_weight(n2, inverse=False, learnable=True, key=kw2)   # (32, 32)

    # Input: (B, 2, n1, n2), axis 1 = [real, imag]
    x = jax.random.normal(kx, (B, 2, n1, n2), dtype=jnp.float32)

    ref = jax.block_until_ready(ref_forward(x, W1, W2))

    # Strict f32 checks on both code paths.
    out_combined = jax.block_until_ready(
        learnable_fourier2d(x, W1, W2, compute_dtype=jnp.float32))
    out_separable = jax.block_until_ready(
        learnable_fourier2d(x, W1, W2, compute_dtype=jnp.float32,
                            combined_threshold=0))
    assert out_combined.shape == (B, 2, n1, n2)
    assert jnp.allclose(out_combined, ref, rtol=1e-4, atol=5e-4), "combined path mismatch"
    assert jnp.allclose(out_separable, ref, rtol=1e-4, atol=5e-4), "separable path mismatch"

    # Auto compute dtype (bf16 on v6e/v7x, f32 elsewhere): loose tolerance by design.
    out_auto = jax.block_until_ready(learnable_fourier2d(x, W1, W2))
    assert jnp.allclose(out_auto, ref, rtol=5e-2, atol=1e-1), "auto-dtype path mismatch"

    print("KERNEL_OK")
</pallas_src>

<mosaic_0001>
module attributes {stable_mosaic.version = 11 : i64} {
  func.func @_combined_kernel(%arg0: i32, %arg1: memref<8x512xf32, #tpu.memory_space<vmem>>, %arg2: memref<512x512xf32, #tpu.memory_space<vmem>>, %arg3: memref<8x512xf32, #tpu.memory_space<vmem>>) attributes {dimension_semantics = [#tpu.dimension_semantics<parallel>], iteration_bounds = array<i64: 2>, scalar_prefetch = 0 : i64, scratch_operands = 0 : i64, tpu.core_type = #tpu.core_type<tc>, window_params = [{transform_indices = @transform_0, window_bounds = array<i64: 8, 512>}, {pipeline_mode = #tpu.pipeline_mode<synchronous>, transform_indices = @transform_1, window_bounds = array<i64: 512, 512>}, {transform_indices = @transform_2, window_bounds = array<i64: 8, 512>}]} {
    %c0 = arith.constant 0 : index
    %c0_0 = arith.constant 0 : index
    %0 = vector.load %arg1[%c0, %c0_0] : memref<8x512xf32, #tpu.memory_space<vmem>>, vector<8x512xf32>
    %c0_1 = arith.constant 0 : index
    %c0_2 = arith.constant 0 : index
    %1 = vector.load %arg2[%c0_1, %c0_2] : memref<512x512xf32, #tpu.memory_space<vmem>>, vector<512x512xf32>
    %cst = arith.constant dense<0.000000e+00> : vector<8x512xf32>
    %2 = tpu.matmul %0, %1, %cst {dimension_numbers = #tpu.dot_dimension_numbers<[1], [0], [0], [1], [0, 0, 1, 1], [], []>} : vector<8x512xf32>, vector<512x512xf32>, vector<8x512xf32> -> vector<8x512xf32>
    %c0_3 = arith.constant 0 : index
    %c0_4 = arith.constant 0 : index
    %3 = vector.load %arg3[%c0_3, %c0_4] : memref<8x512xf32, #tpu.memory_space<vmem>>, vector<8x512xf32>
    tpu.vector_store %arg3[%c0_3, %c0_4], %2 {strides = array<i32>} : memref<8x512xf32, #tpu.memory_space<vmem>>, vector<8x512xf32>,
    return
  }
  func.func @transform_0(%arg0: i32) -> (i32, i32) {
    %c0_i32 = arith.constant 0 : i32
    %c0_i32_0 = arith.constant 0 : i32
    return %arg0, %c0_i32 : i32, i32
  }
  func.func @transform_1(%arg0: i32) -> (i32, i32) {
    %c0_i32 = arith.constant 0 : i32
    %c0_i32_0 = arith.constant 0 : i32
    %c0_i32_1 = arith.constant 0 : i32
    return %c0_i32, %c0_i32_0 : i32, i32
  }
  func.func @transform_2(%arg0: i32) -> (i32, i32) {
    %c0_i32 = arith.constant 0 : i32
    %c0_i32_0 = arith.constant 0 : i32
    return %arg0, %c0_i32 : i32, i32
  }
}

</mosaic_0001>

<bundles_post_ra>
// kernel: tpu_custom_call.1
= control target key start
LH: loop header
LB: loop body
LE: loop exit
PB: predicated region body
PF: predicated region fallthrough
CT: control target
= control target key end

     0   :  { %7 = vsyncpa [#allocation3], 0  ;;  %s1511_s0 = inlined_call_operand.hbm [shape: f32[16,512], index: 0, kind: input, shape index: {}]   ;;  %s1512_s1 = inlined_call_operand.hbm [shape: f32[512,512], index: 1, kind: input, shape index: {}]   ;;  %s1513_s2 = inlined_call_operand.hbm [shape: f32[16,512], index: 2, kind: output, shape index: {}]  }
   0x1   :  { %9 = vsyncpa [#allocation3 + $0x1], 0 }
   0x2   :  { %10 = vsyncpa [#allocation6], 0 }
   0x3   :  { %11 = vsyncpa [#allocation4], 0 }
   0x4   :  { %13 = vsyncpa [#allocation4 + $0x1], 0  ;;  %s1305_s9 = smov 0   ;;  %s1307_s10 = smov 0  }
   0x5   :  { %s1309_s11 = smov 0   ;;  %s1311_s12 = smov 0  }
   0x6 LB: > { %s1326_s13 = sadd.s32 4294967295, %s1283_s12   ;;  %s818_s14 = sadd.s32 4294967294, %s1283_s12   ;;  %s1283_s12 = sphi %s1311_s12, %s1533_s12   ;;  %s1279_s11 = sphi %s1309_s11, %s1532_s11   ;;  %s1275_s10 = sphi %s1307_s10, %s1531_s10   ;;  %s1271_s9 = sphi %s1305_s9, %s1530_s9  }
   0x7   : > { %p39_p0 = scmp.ne.s32.totalorder %s1275_s10, %s1271_s9  ;;  %p1514_p1 = scmp.eq.s32.totalorder %s1326_s13, 0 }
   0x8   : > { %p90_p3 = scmp.eq.s32.totalorder %s818_s14, 1  ;;  %p819_p5 = scmp.ge.s32.totalorder %s1283_s12, 1 }
   0x9   : > { %p1335_p4 = por %p1514_p1, %p39_p0  ;;  %p97_p7 = scmp.lt.s32.totalorder %s1283_s12, 3 }
   0xa   : > { %p1340_p6 = por %p90_p3, %p39_p0  ;;  %s1285_s18 = smov [#allocation5]  }
   0xb   : > { %s1517_s15 = scalar_select %p1335_p4, 1, 0 }
   0xc   : > { %s1518_s16 = scalar_select %p1340_p6, 1, 0 }
   0xd   : > { %p1345_p8 = pnand %p819_p5, %p97_p7  ;;  %s109_s19 = sshll.u32 %s1285_s18, 4  ;;  %s1349_s19 = int_to_ptr.vmem [resolvable:$true] %s109_s19 }
   0xe   : > { %s1361_s21 = sadd.s32 1, %s1283_s12   ;;  %s26_s22 = sadd.s32 1, %s1279_s11 }
   0xf   : > { %s1519_s17 = scalar_select %p1345_p8, 1, 0 }
  0x10   : > { %p1104_p9 = pneg %p1345_p8  ;;  %s23_s23 = ssub.s32 %s1283_s12, %s1361_s21 }
  0x11   : > { %s1155_s26 = scalar_lea.hbm %s1512_s1, 32768 }
  0x12   : > { %p1356_p11 = pnand %p1104_p9, %p1514_p1  ;;  %p1156_p12 = scmp.ne.s32.totalorder %s1512_s1, %s1155_s26 }
  0x13   : > { %p1162_p5 = scmp.lt.u32.totalorder %s1155_s26, %s1512_s1 }
  0x14   : > { %p1157_p13 = pneg %p1356_p11 }
  0x16   : > { %p1158_p0 = pnand %p1157_p13, %p1156_p12 }
  0x18   : > { %p1159_p3 = pneg %p1158_p0 }
  0x1a   : > { %p1164_p7 = pnand %p1162_p5, %p1159_p3 }
  0x1c   : > { %1167 = shalt.err (!%p1164_p7)
}
  0x1d   : > { %s1168_s3 = scalar_lea.vmem %s1349_s19, 32768  ;;  %p1176_p2 = scmp.lt.s32.totalorder %s1349_s19, %s1349_s19 }
  0x1e   : > { %p1169_p9 = scmp.ne.s32.totalorder %s1349_s19, %s1168_s3  ;;  %p1177_p6 = scmp.lt.s32.totalorder %s1168_s3, %s1168_s3 }
  0x20   : > { %p1171_p10 = pnand %p1169_p9, %p1157_p13  ;;  %p1178_p4 = por %p1177_p6, %p1176_p2 }
  0x22   : > { %p1172_p1 = pneg %p1171_p10 }
  0x24   : > { %p1179_p8 = pnand %p1178_p4, %p1172_p1 }
  0x26   : > { %1182 = shalt.err (!%p1179_p8)
}
  0x27   : > { %s1286_s4 = smov 512   ;;  %s1287_s5 = smov 32  }
  0x28   : > { %1107 = dma.hbm_to_vmem [thread:$0]  (!%p1356_p11), %s1512_s1, 32768, %s1349_s19, [#allocation6], %s1286_s4, %s1286_s4, %s1287_s5  }
  0x29   : > { %p24_p2 = scmp.eq.s32.totalorder %s23_s23, 0  ;;  %p33_p1 = scmp.ne.s32.totalorder %s1279_s11, %s1275_s10 }
  0x2a   : > { %p34_p4 = scmp.eq.s32.totalorder %s1283_s12, 0  ;;  %p1117_p6 = scmp.lt.s32.totalorder %s1283_s12, 2 }
  0x2b   : > { %s1392_s8 = scalar_select %p24_p2, %s1279_s11, %s26_s22  }
  0x2c   : > { %p35_p8 = por %p34_p4, %p33_p1  ;;  %p1521_p10 = scmp.eq.s32.totalorder %s1326_s13, 1 }
  0x2d   : > { %s123_s18 = sand.u32 1, %s1279_s11   ;;  %s834_s24 = sshll.u32 %s1283_s12, 9 }
  0x2e   : > { %p1396_p12 = por %p1521_p10, %p33_p1  ;;  %s822_s25 = sshll.u32 %s123_s18, 5 }
  0x2f   : > { %s1405_s27 = scalar_lea.hbm %s1511_s0, %s834_s24  ;;  %s127_s19 = scalar_lea.vmem [#allocation2], %s822_s25 }
  0x30   : > { %s135_s22 = sshll.u32 %s127_s19, 4  ;;  %p1407_p11 = pnand %p1117_p6, %p35_p8  ;;  %s1411_s22 = int_to_ptr.vmem [resolvable:$true] %s135_s22 }
  0x31   : > { %s124_s28 = scalar_lea.sflag [#allocation3], %s123_s18  ;;  %s1183_s29 = scalar_lea.hbm %s1405_s27, 512 }
  0x32   : > { %p1184_p13 = scmp.ne.s32.totalorder %s1405_s27, %s1183_s29  ;;  %p1185_p0 = pneg %p1407_p11 }
  0x33   : > { %s1188_s4 = scalar_lea.hbm %s1511_s0, 1024  ;;  %p1189_p7 = scmp.lt.u32.totalorder %s1405_s27, %s1511_s0 }
  0x34   : > { %p1186_p3 = pnand %p1185_p0, %p1184_p13  ;;  %p1190_p9 = scmp.lt.u32.totalorder %s1188_s4, %s1183_s29 }
  0x35   : > { %p1192_p1 = scmp.lt.u32.totalorder %s1183_s29, %s1405_s27 }
  0x36   : > { %p1187_p5 = pneg %p1186_p3  ;;  %p1191_p2 = por %p1190_p9, %p1189_p7 }
  0x38   : > { %p1193_p4 = por %p1192_p1, %p1191_p2 }
  0x3a   : > { %p1194_p6 = pnand %p1193_p4, %p1187_p5 }
  0x3c   : > { %1197 = shalt.err (!%p1194_p6)
}
  0x3d   : > { %s1198_s7 = scalar_lea.vmem %s1411_s22, 512  ;;  %s1288_s18 = smov [#allocation2]  }
  0x3e   : > { %p1199_p8 = scmp.ne.s32.totalorder %s1411_s22, %s1198_s7  ;;  %s1203_s24 = sshll.u32 %s1288_s18, 4  ;;  %s1204_s24 = int_to_ptr.vmem [resolvable:$false] %s1203_s24 }
  0x3f   : > { %s1205_s25 = scalar_lea.vmem %s1204_s24, 1024  ;;  %p1206_p3 = scmp.lt.s32.totalorder %s1411_s22, %s1204_s24 }
  0x40   : > { %p1201_p10 = pnand %p1199_p8, %p1185_p0  ;;  %p1207_p7 = scmp.lt.s32.totalorder %s1205_s25, %s1198_s7 }
  0x42   : > { %p1202_p13 = pneg %p1201_p10  ;;  %p1208_p9 = por %p1207_p7, %p1206_p3 }
  0x44   : > { %p1209_p2 = pnand %p1208_p9, %p1202_p13 }
  0x46   : > { %1212 = shalt.err (!%p1209_p2)
}
  0x47   : > { %1111 = dma.hbm_to_vmem [thread:$0]  (!%p1407_p11), %s1405_s27, 512, %s1411_s22, %s124_s28  }
  0x48   : > { %p1524_p5 = scmp.ne.s32.totalorder %s1519_s17, 0 }
  0x49   : > { %s1441_s20 = sand.u32 (!%p1524_p5), 1, %s1275_s10   ;;  %p1525_p0 = scmp.ne.s32.totalorder (!%p1524_p5), %s1517_s15, 0 }
  0x4a   : > { %144 = sbr.rel (%p1524_p5) target bundleno = 445 (0x1bd), region = 28  ;;  %s826_s26 = sshll.u32 (!%p1524_p5), %s1441_s20, 5 }
  0x4b   : > { %s147_s19 = scalar_lea.sflag (!%p1524_p5), [#allocation3], %s1441_s20  ;;  %s1447_s29 = scalar_lea.vmem (!%p1524_p5), [#allocation2], %s826_s26 }
  0x51   : > { %1258 = dma.done.wait (%p1525_p0), %s147_s19, 512  }
  0x52   : > { %1260 = vsyncadd (%p1525_p0), %s147_s19, 4294966784  ;;  %p1526_p11 = scmp.eq.s32.totalorder %s1326_s13, 0 }
  0x54   : > { %1262 = dma.done.wait (%p1526_p11), [#allocation6], 32768   ;;  %p1527_p1 = pmov %p1526_p11 }
  0x55   : > { %v180_v0 = vld [vmem:[#allocation5 + $0x8] sm:$0xff]  ;;  %v182_v2 = vld [vmem:[#allocation5 + $0x18] sm:$0xff]  ;;  %v179_v5 = vld [vmem:[#allocation5] sm:$0xff]  ;;  %s174_s15 = scalar_lea.vmem [#allocation7], %s826_s26  ;;  %s835_s27 = sshll.u32 %s1326_s13, 9 }
  0x56   : > { %1264 = vsyncadd (%p1527_p1), [#allocation6], 4294934528  ;;  %v184_v1 = vld [vmem:[#allocation5 + $0x28] sm:$0xff]  ;;  %v186_v4 = vld [vmem:[#allocation5 + $0x38] sm:$0xff]  ;;  %s738_s17 = sshll.u32 %s174_s15, 4  ;;  %s1469_s28 = scalar_lea.hbm %s1513_s2, %s835_s27  ;;  %s1464_s17 = int_to_ptr.vmem [resolvable:$true] %s738_s17 }
  0x57   : > { %v836_v3 = vpack.c.bf16 %v184_v1, %v180_v0  ;;  %v183_v6 = vld [vmem:[#allocation5 + $0x20] sm:$0xff]  ;;  %v964_v7 = vpack.c.bf16 %v186_v4, %v182_v2  ;;  %v181_v9 = vld [vmem:[#allocation5 + $0x10] sm:$0xff]  ;;  %v188_v11 = vld [vmem:[#allocation5 + $0x48] sm:$0xff]  ;;  %s724_s30 = scalar_lea.sflag [#allocation4], %s1441_s20  ;;  %s1213_s13 = scalar_lea.vmem %s1464_s17, 512 }
  0x58   : > { %v838_v8 = vpack.c.bf16 %v183_v6, %v179_v5  ;;  %v185_v10 = vld [vmem:[#allocation5 + $0x30] sm:$0xff]  ;;  %v192_v13 = vld [vmem:[#allocation5 + $0x68] sm:$0xff]  ;;  %v190_v14 = vld [vmem:[#allocation5 + $0x58] sm:$0xff]  ;;  %p1214_p4 = scmp.ne.s32.totalorder %s1464_s17, %s1213_s13  ;;  %s1289_s3 = smov [#allocation7]  }
  0x59   : > { %837 = vmatprep.subr.bf16.mxu0 %v836_v3  ;;  %v966_v12 = vpack.c.bf16 %v185_v10, %v181_v9  ;;  %v194_v15 = vld [vmem:[#allocation5 + $0x78] sm:$0xff]  ;;  %965 = vmatprep.subr.bf16.mxu1 %v964_v7  ;;  %v840_v16 = vpack.c.bf16 %v192_v13, %v188_v11  ;;  %v187_v18 = vld [vmem:[#allocation5 + $0x40] sm:$0xff]  ;;  %v189_v20 = vld [vmem:[#allocation5 + $0x50] sm:$0xff]  ;;  %s1217_s4 = sshll.u32 %s1289_s3, 4  ;;  %s1218_s4 = int_to_ptr.vmem [resolvable:$false] %s1217_s4 }
  0x5a   : > { %839 = vmatpush1.bf16.msra.mxu0 %v838_v8  ;;  %v968_v17 = vpack.c.bf16 %v194_v15, %v190_v14  ;;  %v191_v19 = vld [vmem:[#allocation5 + $0x60] sm:$0xff]  ;;  %v193_v22 = vld [vmem:[#allocation5 + $0x70] sm:$0xff]  ;;  %v196_v23 = vld [vmem:[#allocation5 + $0x88] sm:$0xff]  ;;  %p1215_p6 = pnand %p1214_p4, %p1396_p12  ;;  %s1219_s5 = scalar_lea.vmem %s1218_s4, 1024 }
  0x5b   : > { %967 = vmatpush1.bf16.msra.mxu1 %v966_v12  ;;  %v842_v21 = vpack.c.bf16 %v191_v19, %v187_v18  ;;  %v200_v24 = vld [vmem:[#allocation5 + $0xa8] sm:$0xff]  ;;  %841 = vmatprep.subr.bf16.mxu0 %v840_v16  ;;  %v970_v25 = vpack.c.bf16 %v193_v22, %v189_v20  ;;  %v198_v27 = vld [vmem:[#allocation5 + $0x98] sm:$0xff]  ;;  %v195_v29 = vld [vmem:[#allocation5 + $0x80] sm:$0xff]  ;;  %p1220_p10 = scmp.lt.s32.totalorder %s1464_s17, %s1218_s4  ;;  %p1221_p13 = scmp.lt.s32.totalorder %s1219_s5, %s1213_s13 }
  0x5c   : > { %969 = vmatprep.subr.bf16.mxu1 %v968_v17  ;;  %v844_v26 = vpack.c.bf16 %v200_v24, %v196_v23  ;;  %v202_v28 = vld [vmem:[#allocation5 + $0xb8] sm:$0xff]  ;;  %v199_v31 = vld [vmem:[#allocation5 + $0xa0] sm:$0xff]  ;;  %v197_v32 = vld [vmem:[#allocation5 + $0x90] sm:$0xff]  ;;  %p1216_p8 = pneg %p1215_p6 }
  0x5d   : > { %v972_v30 = vpack.c.bf16 %v202_v28, %v198_v27  ;;  %v201_v33 = vld [vmem:[#allocation5 + $0xb0] sm:$0xff]  ;;  %v846_v34 = vpack.c.bf16 %v199_v31, %v195_v29  ;;  %v204_v35 = vld [vmem:[#allocation5 + $0xc8] sm:$0xff]  ;;  %v206_v37 = vld [vmem:[#allocation5 + $0xd8] sm:$0xff]  ;;  %p1222_p3 = por %p1221_p13, %p1220_p10 }
  0x5e   : > { %843 = vmatpush1.bf16.msra.mxu0 %v842_v21  ;;  %v208_v36 = vld [vmem:[#allocation5 + $0xe8] sm:$0xff]  ;;  %v974_v38 = vpack.c.bf16 %v201_v33, %v197_v32  ;;  %v210_v40 = vld [vmem:[#allocation5 + $0xf8] sm:$0xff]  ;;  %v203_v41 = vld [vmem:[#allocation5 + $0xc0] sm:$0xff] }
  0x5f   : > { %971 = vmatpush1.bf16.msra.mxu1 %v970_v25  ;;  %845 = vmatprep.subr.bf16.mxu0 %v844_v26  ;;  %v848_v39 = vpack.c.bf16 %v208_v36, %v204_v35  ;;  %v207_v42 = vld [vmem:[#allocation5 + $0xe0] sm:$0xff]  ;;  %v976_v43 = vpack.c.bf16 %v210_v40, %v206_v37  ;;  %v205_v44 = vld [vmem:[#allocation5 + $0xd0] sm:$0xff]  ;;  %v212_v46 = vld [vmem:[#allocation5 + $0x108] sm:$0xff]  ;;  %p1223_p7 = pnand %p1222_p3, %p1216_p8 }
  0x60   : > { %973 = vmatprep.subr.bf16.mxu1 %v972_v30  ;;  %v209_v45 = vld [vmem:[#allocation5 + $0xf0] sm:$0xff]  ;;  %v216_v47 = vld [vmem:[#allocation5 + $0x128] sm:$0xff]  ;;  %v214_v48 = vld [vmem:[#allocation5 + $0x118] sm:$0xff]  ;;  %v850_v50 = vpack.c.bf16 %v207_v42, %v203_v41 }
  0x61   : > { %v218_v49 = vld [vmem:[#allocation5 + $0x138] sm:$0xff]  ;;  %v978_v51 = vpack.c.bf16 %v209_v45, %v205_v44  ;;  %v852_v52 = vpack.c.bf16 %v216_v47, %v212_v46  ;;  %v211_v53 = vld [vmem:[#allocation5 + $0x100] sm:$0xff]  ;;  %v213_v55 = vld [vmem:[#allocation5 + $0x110] sm:$0xff] }
  0x62   : > { %847 = vmatpush1.bf16.msra.mxu0 %v846_v34  ;;  %v215_v54 = vld [vmem:[#allocation5 + $0x120] sm:$0xff]  ;;  %v980_v56 = vpack.c.bf16 %v218_v49, %v214_v48  ;;  %v217_v57 = vld [vmem:[#allocation5 + $0x130] sm:$0xff]  ;;  %v220_v58 = vld [vmem:[#allocation5 + $0x148] sm:$0xff] }
  0x63   : > { %975 = vmatpush1.bf16.msra.mxu1 %v974_v38  ;;  %849 = vmatprep.subr.bf16.mxu0 %v848_v39  ;;  %v224_v59 = vld [vmem:[#allocation5 + $0x168] sm:$0xff]  ;;  %v222_v60 = vld [vmem:[#allocation5 + $0x158] sm:$0xff]  ;;  %v854_v62 = vpack.c.bf16 %v215_v54, %v211_v53  ;;  %v982_v63 = vpack.c.bf16 %v217_v57, %v213_v55  ;;  %v219_v1 = vld [vmem:[#allocation5 + $0x140] sm:$0xff] }
  0x64   : > { %977 = vmatprep.subr.bf16.mxu1 %v976_v43  ;;  %v226_v61 = vld [vmem:[#allocation5 + $0x178] sm:$0xff]  ;;  %v856_v0 = vpack.c.bf16 %v224_v59, %v220_v58  ;;  %v223_v2 = vld [vmem:[#allocation5 + $0x160] sm:$0xff]  ;;  %v221_v3 = vld [vmem:[#allocation5 + $0x150] sm:$0xff] }
  0x65   : > { %v984_v4 = vpack.c.bf16 %v226_v61, %v222_v60  ;;  %v225_v5 = vld [vmem:[#allocation5 + $0x170] sm:$0xff]  ;;  %v228_v6 = vld [vmem:[#allocation5 + $0x188] sm:$0xff]  ;;  %v230_v8 = vld [vmem:[#allocation5 + $0x198] sm:$0xff]  ;;  %v858_v10 = vpack.c.bf16 %v223_v2, %v219_v1 }
  0x66   : > { %851 = vmatpush1.bf16.msra.mxu0 %v850_v50  ;;  %v232_v7 = vld [vmem:[#allocation5 + $0x1a8] sm:$0xff]  ;;  %v234_v9 = vld [vmem:[#allocation5 + $0x1b8] sm:$0xff]  ;;  %v986_v11 = vpack.c.bf16 %v225_v5, %v221_v3  ;;  %v227_v13 = vld [vmem:[#allocation5 + $0x180] sm:$0xff] }
  0x67   : > { %979 = vmatpush1.bf16.msra.mxu1 %v978_v51  ;;  %853 = vmatprep.subr.bf16.mxu0 %v852_v52  ;;  %v860_v12 = vpack.c.bf16 %v232_v7, %v228_v6  ;;  %v231_v14 = vld [vmem:[#allocation5 + $0x1a0] sm:$0xff]  ;;  %v229_v15 = vld [vmem:[#allocation5 + $0x190] sm:$0xff]  ;;  %v988_v16 = vpack.c.bf16 %v234_v9, %v230_v8  ;;  %v236_v18 = vld [vmem:[#allocation5 + $0x1c8] sm:$0xff] }
  0x68   : > { %981 = vmatprep.subr.bf16.mxu1 %v980_v56  ;;  %v233_v17 = vld [vmem:[#allocation5 + $0x1b0] sm:$0xff]  ;;  %v240_v19 = vld [vmem:[#allocation5 + $0x1e8] sm:$0xff]  ;;  %v238_v20 = vld [vmem:[#allocation5 + $0x1d8] sm:$0xff]  ;;  %v862_v22 = vpack.c.bf16 %v231_v14, %v227_v13 }
  0x69   : > { %v242_v21 = vld [vmem:[#allocation5 + $0x1f8] sm:$0xff]  ;;  %v990_v23 = vpack.c.bf16 %v233_v17, %v229_v15  ;;  %v864_v24 = vpack.c.bf16 %v240_v19, %v236_v18  ;;  %v235_v25 = vld [vmem:[#allocation5 + $0x1c0] sm:$0xff]  ;;  %v237_v27 = vld [vmem:[#allocation5 + $0x1d0] sm:$0xff] }
  0x6a   : > { %855 = vmatpush1.bf16.msra.mxu0 %v854_v62  ;;  %v239_v26 = vld [vmem:[#allocation5 + $0x1e0] sm:$0xff]  ;;  %v992_v28 = vpack.c.bf16 %v242_v21, %v238_v20  ;;  %v241_v29 = vld [vmem:[#allocation5 + $0x1f0] sm:$0xff]  ;;  %v244_v30 = vld [vmem:[#allocation5 + $0x208] sm:$0xff] }
  0x6b   : > { %983 = vmatpush1.bf16.msra.mxu1 %v982_v63  ;;  %857 = vmatprep.subr.bf16.mxu0 %v856_v0  ;;  %v248_v31 = vld [vmem:[#allocation5 + $0x228] sm:$0xff]  ;;  %v246_v32 = vld [vmem:[#allocation5 + $0x218] sm:$0xff]  ;;  %v866_v34 = vpack.c.bf16 %v239_v26, %v235_v25  ;;  %v994_v35 = vpack.c.bf16 %v241_v29, %v237_v27  ;;  %v243_v37 = vld [vmem:[#allocation5 + $0x200] sm:$0xff] }
  0x6c   : > { %985 = vmatprep.subr.bf16.mxu1 %v984_v4  ;;  %v250_v33 = vld [vmem:[#allocation5 + $0x238] sm:$0xff]  ;;  %v868_v36 = vpack.c.bf16 %v248_v31, %v244_v30  ;;  %v247_v38 = vld [vmem:[#allocation5 + $0x220] sm:$0xff]  ;;  %v245_v39 = vld [vmem:[#allocation5 + $0x210] sm:$0xff] }
  0x6d   : > { %v996_v40 = vpack.c.bf16 %v250_v33, %v246_v32  ;;  %v249_v41 = vld [vmem:[#allocation5 + $0x230] sm:$0xff]  ;;  %v252_v42 = vld [vmem:[#allocation5 + $0x248] sm:$0xff]  ;;  %v254_v44 = vld [vmem:[#allocation5 + $0x258] sm:$0xff]  ;;  %v870_v46 = vpack.c.bf16 %v247_v38, %v243_v37 }
  0x6e   : > { %859 = vmatpush1.bf16.msra.mxu0 %v858_v10  ;;  %v256_v43 = vld [vmem:[#allocation5 + $0x268] sm:$0xff]  ;;  %v258_v45 = vld [vmem:[#allocation5 + $0x278] sm:$0xff]  ;;  %v998_v47 = vpack.c.bf16 %v249_v41, %v245_v39  ;;  %v251_v49 = vld [vmem:[#allocation5 + $0x240] sm:$0xff] }
  0x6f   : > { %987 = vmatpush1.bf16.msra.mxu1 %v986_v11  ;;  %861 = vmatprep.subr.bf16.mxu0 %v860_v12  ;;  %v872_v48 = vpack.c.bf16 %v256_v43, %v252_v42  ;;  %v255_v50 = vld [vmem:[#allocation5 + $0x260] sm:$0xff]  ;;  %v253_v51 = vld [vmem:[#allocation5 + $0x250] sm:$0xff]  ;;  %v1000_v52 = vpack.c.bf16 %v258_v45, %v254_v44  ;;  %v260_v54 = vld [vmem:[#allocation5 + $0x288] sm:$0xff] }
  0x70   : > { %989 = vmatprep.subr.bf16.mxu1 %v988_v16  ;;  %v257_v53 = vld [vmem:[#allocation5 + $0x270] sm:$0xff]  ;;  %v264_v55 = vld [vmem:[#allocation5 + $0x2a8] sm:$0xff]  ;;  %v262_v56 = vld [vmem:[#allocation5 + $0x298] sm:$0xff]  ;;  %v874_v58 = vpack.c.bf16 %v255_v50, %v251_v49 }
  0x71   : > { %v266_v57 = vld [vmem:[#allocation5 + $0x2b8] sm:$0xff]  ;;  %v1002_v59 = vpack.c.bf16 %v257_v53, %v253_v51  ;;  %v876_v60 = vpack.c.bf16 %v264_v55, %v260_v54  ;;  %v259_v61 = vld [vmem:[#allocation5 + $0x280] sm:$0xff]  ;;  %v261_v63 = vld [vmem:[#allocation5 + $0x290] sm:$0xff] }
  0x72   : > { %863 = vmatpush1.bf16.msra.mxu0 %v862_v22  ;;  %v263_v62 = vld [vmem:[#allocation5 + $0x2a0] sm:$0xff]  ;;  %v1004_v0 = vpack.c.bf16 %v266_v57, %v262_v56  ;;  %v265_v1 = vld [vmem:[#allocation5 + $0x2b0] sm:$0xff]  ;;  %v268_v2 = vld [vmem:[#allocation5 + $0x2c8] sm:$0xff] }
  0x73   : > { %991 = vmatpush1.bf16.msra.mxu1 %v990_v23  ;;  %865 = vmatprep.subr.bf16.mxu0 %v864_v24  ;;  %v272_v3 = vld [vmem:[#allocation5 + $0x2e8] sm:$0xff]  ;;  %v270_v4 = vld [vmem:[#allocation5 + $0x2d8] sm:$0xff]  ;;  %v878_v6 = vpack.c.bf16 %v263_v62, %v259_v61  ;;  %v267_v7 = vld [vmem:[#allocation5 + $0x2c0] sm:$0xff]  ;;  %v1006_v8 = vpack.c.bf16 %v265_v1, %v261_v63 }
  0x74   : > { %993 = vmatprep.subr.bf16.mxu1 %v992_v28  ;;  %v274_v5 = vld [vmem:[#allocation5 + $0x2f8] sm:$0xff]  ;;  %v880_v9 = vpack.c.bf16 %v272_v3, %v268_v2  ;;  %v271_v10 = vld [vmem:[#allocation5 + $0x2e0] sm:$0xff]  ;;  %v269_v11 = vld [vmem:[#allocation5 + $0x2d0] sm:$0xff] }
  0x75   : > { %v273_v12 = vld [vmem:[#allocation5 + $0x2f0] sm:$0xff]  ;;  %v1008_v13 = vpack.c.bf16 %v274_v5, %v270_v4  ;;  %v276_v14 = vld [vmem:[#allocation5 + $0x308] sm:$0xff]  ;;  %v278_v17 = vld [vmem:[#allocation5 + $0x318] sm:$0xff]  ;;  %v882_v19 = vpack.c.bf16 %v271_v10, %v267_v7 }
  0x76   : > { %867 = vmatpush1.bf16.msra.mxu0 %v866_v34  ;;  %v280_v15 = vld [vmem:[#allocation5 + $0x328] sm:$0xff]  ;;  %v282_v18 = vld [vmem:[#allocation5 + $0x338] sm:$0xff]  ;;  %v1010_v20 = vpack.c.bf16 %v273_v12, %v269_v11  ;;  %v275_v22 = vld [vmem:[#allocation5 + $0x300] sm:$0xff] }
  0x77   : > { %995 = vmatpush1.bf16.msra.mxu1 %v994_v35  ;;  %869 = vmatprep.subr.bf16.mxu0 %v868_v36  ;;  %v176_v16 = vld [vmem:[%s1447_s29 + $0x8] sm:$0xff]  ;;  %v884_v21 = vpack.c.bf16 %v280_v15, %v276_v14  ;;  %v279_v23 = vld [vmem:[#allocation5 + $0x320] sm:$0xff]  ;;  %v277_v24 = vld [vmem:[#allocation5 + $0x310] sm:$0xff]  ;;  %v1012_v25 = vpack.c.bf16 %v282_v18, %v278_v17 }
  0x78   : > { %997 = vmatprep.subr.bf16.mxu1 %v996_v40  ;;  %499 = vmatprep.mubr.f32.mxu0 %v176_v16  ;;  %v281_v26 = vld [vmem:[#allocation5 + $0x330] sm:$0xff]  ;;  %v284_v27 = vld [vmem:[#allocation5 + $0x348] sm:$0xff]  ;;  %v286_v29 = vld [vmem:[#allocation5 + $0x358] sm:$0xff]  ;;  %v886_v31 = vpack.c.bf16 %v279_v23, %v275_v22 }
  0x79   : > { %641 = vmatprep.mubr.f32.mxu1 %v176_v16  ;;  %v288_v28 = vld [vmem:[#allocation5 + $0x368] sm:$0xff]  ;;  %v290_v30 = vld [vmem:[#allocation5 + $0x378] sm:$0xff]  ;;  %v1014_v32 = vpack.c.bf16 %v281_v26, %v277_v24  ;;  %v283_v34 = vld [vmem:[#allocation5 + $0x340] sm:$0xff] }
  0x7a   : > { %871 = vmatpush1.bf16.msra.mxu0 %v870_v46  ;;  %v888_v33 = vpack.c.bf16 %v288_v28, %v284_v27  ;;  %v287_v35 = vld [vmem:[#allocation5 + $0x360] sm:$0xff]  ;;  %v285_v36 = vld [vmem:[#allocation5 + $0x350] sm:$0xff]  ;;  %v1016_v37 = vpack.c.bf16 %v290_v30, %v286_v29  ;;  %v292_v39 = vld [vmem:[#allocation5 + $0x388] sm:$0xff] }
  0x7b   : > { %999 = vmatpush1.bf16.msra.mxu1 %v998_v47  ;;  %873 = vmatprep.subr.bf16.mxu0 %v872_v48  ;;  %v289_v38 = vld [vmem:[#allocation5 + $0x370] sm:$0xff]  ;;  %v296_v40 = vld [vmem:[#allocation5 + $0x3a8] sm:$0xff]  ;;  %v294_v41 = vld [vmem:[#allocation5 + $0x398] sm:$0xff]  ;;  %v890_v43 = vpack.c.bf16 %v287_v35, %v283_v34 }
  0x7c   : > { %1001 = vmatprep.subr.bf16.mxu1 %v1000_v52  ;;  %v298_v42 = vld [vmem:[#allocation5 + $0x3b8] sm:$0xff]  ;;  %v1018_v44 = vpack.c.bf16 %v289_v38, %v285_v36  ;;  %v892_v45 = vpack.c.bf16 %v296_v40, %v292_v39  ;;  %v291_v46 = vld [vmem:[#allocation5 + $0x380] sm:$0xff]  ;;  %v293_v48 = vld [vmem:[#allocation5 + $0x390] sm:$0xff] }
  0x7d   : > { %v295_v47 = vld [vmem:[#allocation5 + $0x3a0] sm:$0xff]  ;;  %v1020_v49 = vpack.c.bf16 %v298_v42, %v294_v41  ;;  %v297_v50 = vld [vmem:[#allocation5 + $0x3b0] sm:$0xff]  ;;  %v300_v51 = vld [vmem:[#allocation5 + $0x3c8] sm:$0xff] }
  0x7e   : > { %875 = vmatpush1.bf16.msra.mxu0 %v874_v58  ;;  %v304_v52 = vld [vmem:[#allocation5 + $0x3e8] sm:$0xff]  ;;  %v302_v53 = vld [vmem:[#allocation5 + $0x3d8] sm:$0xff]  ;;  %v894_v55 = vpack.c.bf16 %v295_v47, %v291_v46  ;;  %v1022_v56 = vpack.c.bf16 %v297_v50, %v293_v48  ;;  %v299_v58 = vld [vmem:[#allocation5 + $0x3c0] sm:$0xff] }
  0x7f   : > { %1003 = vmatpush1.bf16.msra.mxu1 %v1002_v59  ;;  %877 = vmatprep.subr.bf16.mxu0 %v876_v60  ;;  %v306_v54 = vld [vmem:[#allocation5 + $0x3f8] sm:$0xff]  ;;  %v896_v57 = vpack.c.bf16 %v304_v52, %v300_v51  ;;  %v303_v59 = vld [vmem:[#allocation5 + $0x3e0] sm:$0xff]  ;;  %v301_v60 = vld [vmem:[#allocation5 + $0x3d0] sm:$0xff] }
  0x80   : > { %1005 = vmatprep.subr.bf16.mxu1 %v1004_v0  ;;  %v1024_v61 = vpack.c.bf16 %v306_v54, %v302_v53  ;;  %v305_v62 = vld [vmem:[#allocation5 + $0x3f0] sm:$0xff]  ;;  %v308_v63 = vld [vmem:[#allocation5 + $0x408] sm:$0xff]  ;;  %v310_v1 = vld [vmem:[#allocation5 + $0x418] sm:$0xff]  ;;  %v898_v3 = vpack.c.bf16 %v303_v59, %v299_v58 }
  0x81   : > { %v312_v0 = vld [vmem:[#allocation5 + $0x428] sm:$0xff]  ;;  %v314_v2 = vld [vmem:[#allocation5 + $0x438] sm:$0xff]  ;;  %v1026_v4 = vpack.c.bf16 %v305_v62, %v301_v60  ;;  %v311_v7 = vld [vmem:[#allocation5 + $0x420] sm:$0xff] }
  0x82   : > { %879 = vmatpush1.bf16.msra.mxu0 %v878_v6  ;;  %v900_v5 = vpack.c.bf16 %v312_v0, %v308_v63  ;;  %v307_v6 = vld [vmem:[#allocation5 + $0x400] sm:$0xff]  ;;  %v313_v10 = vld [vmem:[#allocation5 + $0x430] sm:$0xff]  ;;  %v316_v11 = vld [vmem:[#allocation5 + $0x448] sm:$0xff] }
  0x83   : > { %1007 = vmatpush1.bf16.msra.mxu1 %v1006_v8  ;;  %881 = vmatprep.subr.bf16.mxu0 %v880_v9  ;;  %v309_v8 = vld [vmem:[#allocation5 + $0x410] sm:$0xff]  ;;  %v1028_v9 = vpack.c.bf16 %v314_v2, %v310_v1  ;;  %v320_v12 = vld [vmem:[#allocation5 + $0x468] sm:$0xff]  ;;  %v322_v14 = vld [vmem:[#allocation5 + $0x478] sm:$0xff]  ;;  %v902_v16 = vpack.c.bf16 %v311_v7, %v307_v6 }
  0x84   : > { %1009 = vmatprep.subr.bf16.mxu1 %v1008_v13  ;;  %v318_v13 = vld [vmem:[#allocation5 + $0x458] sm:$0xff]  ;;  %v175_v15 = vld [vmem:[%s1447_s29] sm:$0xff]  ;;  %v1030_v17 = vpack.c.bf16 %v313_v10, %v309_v8  ;;  %v904_v18 = vpack.c.bf16 %v320_v12, %v316_v11  ;;  %v321_v23 = vld [vmem:[#allocation5 + $0x470] sm:$0xff] }
  0x85   : > { %v1032_v22 = vpack.c.bf16 %v322_v14, %v318_v13  ;;  %v324_v24 = vld [vmem:[#allocation5 + $0x488] sm:$0xff]  ;;  %v326_v26 = vld [vmem:[#allocation5 + $0x498] sm:$0xff]  ;;  %v329_v35 = vld [vmem:[#allocation5 + $0x4b0] sm:$0xff] }
  0x86   : > { %883 = vmatpush1.bf16.msra.mxu0 %v882_v19  ;;  %v315_v19 = vld [vmem:[#allocation5 + $0x440] sm:$0xff]  ;;  %v330_v27 = vld [vmem:[#allocation5 + $0x4b8] sm:$0xff]  ;;  %v332_v36 = vld [vmem:[#allocation5 + $0x4c8] sm:$0xff] }
  0x87   : > { %1011 = vmatpush1.bf16.msra.mxu1 %v1010_v20  ;;  %885 = vmatprep.subr.bf16.mxu0 %v884_v21  ;;  %v319_v20 = vld [vmem:[#allocation5 + $0x460] sm:$0xff]  ;;  %v317_v21 = vld [vmem:[#allocation5 + $0x450] sm:$0xff]  ;;  %v1036_v34 = vpack.c.bf16 %v330_v27, %v326_v26  ;;  %v334_v38 = vld [vmem:[#allocation5 + $0x4d8] sm:$0xff] }
  0x88   : > { %1013 = vmatprep.subr.bf16.mxu1 %v1012_v25  ;;  %v328_v25 = vld [vmem:[#allocation5 + $0x4a8] sm:$0xff]  ;;  %v906_v28 = vpack.c.bf16 %v319_v20, %v315_v19  ;;  %v1034_v29 = vpack.c.bf16 %v321_v23, %v317_v21  ;;  %v338_v39 = vld [vmem:[#allocation5 + $0x4f8] sm:$0xff]  ;;  %v337_v47 = vld [vmem:[#allocation5 + $0x4f0] sm:$0xff] }
  0x89   : > { %v908_v30 = vpack.c.bf16 %v328_v25, %v324_v24  ;;  %v1040_v46 = vpack.c.bf16 %v338_v39, %v334_v38  ;;  %v340_v48 = vld [vmem:[#allocation5 + $0x508] sm:$0xff]  ;;  %v342_v50 = vld [vmem:[#allocation5 + $0x518] sm:$0xff]  ;;  %v345_v59 = vld [vmem:[#allocation5 + $0x530] sm:$0xff] }
  0x8a   : > { %887 = vmatpush1.bf16.msra.mxu0 %v886_v31  ;;  %v323_v31 = vld [vmem:[#allocation5 + $0x480] sm:$0xff]  ;;  %v346_v51 = vld [vmem:[#allocation5 + $0x538] sm:$0xff]  ;;  %v348_v60 = vld [vmem:[#allocation5 + $0x548] sm:$0xff] }
  0x8b   : > { %1015 = vmatpush1.bf16.msra.mxu1 %v1014_v32  ;;  %889 = vmatprep.subr.bf16.mxu0 %v888_v33  ;;  %v327_v32 = vld [vmem:[#allocation5 + $0x4a0] sm:$0xff]  ;;  %v325_v33 = vld [vmem:[#allocation5 + $0x490] sm:$0xff]  ;;  %v1044_v58 = vpack.c.bf16 %v346_v51, %v342_v50  ;;  %v350_v62 = vld [vmem:[#allocation5 + $0x558] sm:$0xff] }
  0x8c   : > { %1017 = vmatprep.subr.bf16.mxu1 %v1016_v37  ;;  %v336_v37 = vld [vmem:[#allocation5 + $0x4e8] sm:$0xff]  ;;  %v910_v40 = vpack.c.bf16 %v327_v32, %v323_v31  ;;  %v1038_v41 = vpack.c.bf16 %v329_v35, %v325_v33  ;;  %v354_v63 = vld [vmem:[#allocation5 + $0x578] sm:$0xff]  ;;  %v353_v7 = vld [vmem:[#allocation5 + $0x570] sm:$0xff] }
  0x8d   : > { %v912_v42 = vpack.c.bf16 %v336_v37, %v332_v36  ;;  %v1048_v6 = vpack.c.bf16 %v354_v63, %v350_v62  ;;  %v356_v8 = vld [vmem:[#allocation5 + $0x588] sm:$0xff]  ;;  %v358_v10 = vld [vmem:[#allocation5 + $0x598] sm:$0xff]  ;;  %v355_v13 = vld [vmem:[#allocation5 + $0x580] sm:$0xff] }
  0x8e   : > { %891 = vmatpush1.bf16.msra.mxu0 %v890_v43  ;;  %v331_v43 = vld [vmem:[#allocation5 + $0x4c0] sm:$0xff]  ;;  %v362_v11 = vld [vmem:[#allocation5 + $0x5b8] sm:$0xff]  ;;  %v364_v20 = vld [vmem:[#allocation5 + $0x5c8] sm:$0xff] }
  0x8f   : > { %1019 = vmatpush1.bf16.msra.mxu1 %v1018_v44  ;;  %893 = vmatprep.subr.bf16.mxu0 %v892_v45  ;;  %v335_v44 = vld [vmem:[#allocation5 + $0x4e0] sm:$0xff]  ;;  %v333_v45 = vld [vmem:[#allocation5 + $0x4d0] sm:$0xff]  ;;  %v1052_v19 = vpack.c.bf16 %v362_v11, %v358_v10  ;;  %v368_v21 = vld [vmem:[#allocation5 + $0x5e8] sm:$0xff] }
  0x90   : > { %1021 = vmatprep.subr.bf16.mxu1 %v1020_v49  ;;  %v344_v49 = vld [vmem:[#allocation5 + $0x528] sm:$0xff]  ;;  %v914_v52 = vpack.c.bf16 %v335_v44, %v331_v43  ;;  %v1042_v53 = vpack.c.bf16 %v337_v47, %v333_v45  ;;  %v366_v23 = vld [vmem:[#allocation5 + $0x5d8] sm:$0xff]  ;;  %v928_v27 = vpack.c.bf16 %v368_v21, %v364_v20  ;;  %v369_v32 = vld [vmem:[#allocation5 + $0x5f0] sm:$0xff] }
  0x91   : > { %v916_v54 = vpack.c.bf16 %v344_v49, %v340_v48  ;;  %v370_v24 = vld [vmem:[#allocation5 + $0x5f8] sm:$0xff]  ;;  %v372_v33 = vld [vmem:[#allocation5 + $0x608] sm:$0xff]  ;;  %v377_v44 = vld [vmem:[#allocation5 + $0x630] sm:$0xff] }
  0x92   : > { %895 = vmatpush1.bf16.msra.mxu0 %v894_v55  ;;  %v339_v55 = vld [vmem:[#allocation5 + $0x500] sm:$0xff]  ;;  %v1056_v31 = vpack.c.bf16 %v370_v24, %v366_v23  ;;  %v374_v35 = vld [vmem:[#allocation5 + $0x618] sm:$0xff]  ;;  %v380_v45 = vld [vmem:[#allocation5 + $0x648] sm:$0xff] }
  0x93   : > { %1023 = vmatpush1.bf16.msra.mxu1 %v1022_v56  ;;  %897 = vmatprep.subr.bf16.mxu0 %v896_v57  ;;  %v343_v56 = vld [vmem:[#allocation5 + $0x520] sm:$0xff]  ;;  %v341_v57 = vld [vmem:[#allocation5 + $0x510] sm:$0xff]  ;;  %v378_v36 = vld [vmem:[#allocation5 + $0x638] sm:$0xff] }
  0x94   : > { %1025 = vmatprep.subr.bf16.mxu1 %v1024_v61  ;;  %v352_v61 = vld [vmem:[#allocation5 + $0x568] sm:$0xff]  ;;  %v918_v0 = vpack.c.bf16 %v343_v56, %v339_v55  ;;  %v1046_v1 = vpack.c.bf16 %v345_v59, %v341_v57  ;;  %v1060_v43 = vpack.c.bf16 %v378_v36, %v374_v35  ;;  %v382_v47 = vld [vmem:[#allocation5 + $0x658] sm:$0xff]  ;;  %v385_v56 = vld [vmem:[#allocation5 + $0x670] sm:$0xff] }
  0x95   : > { %v920_v2 = vpack.c.bf16 %v352_v61, %v348_v60  ;;  %v386_v48 = vld [vmem:[#allocation5 + $0x678] sm:$0xff]  ;;  %v388_v57 = vld [vmem:[#allocation5 + $0x688] sm:$0xff]  ;;  %v403_v24 = vld [vmem:[#allocation5 + $0x700] sm:$0xff] }
  0x96   : > { %899 = vmatpush1.bf16.msra.mxu0 %v898_v3  ;;  %v347_v3 = vld [vmem:[#allocation5 + $0x540] sm:$0xff]  ;;  %v1064_v55 = vpack.c.bf16 %v386_v48, %v382_v47  ;;  %v390_v59 = vld [vmem:[#allocation5 + $0x698] sm:$0xff] }
  0x97   : > { %1027 = vmatpush1.bf16.msra.mxu1 %v1026_v4  ;;  %901 = vmatprep.subr.bf16.mxu0 %v900_v5  ;;  %v351_v4 = vld [vmem:[#allocation5 + $0x560] sm:$0xff]  ;;  %v349_v5 = vld [vmem:[#allocation5 + $0x550] sm:$0xff]  ;;  %v394_v60 = vld [vmem:[#allocation5 + $0x6b8] sm:$0xff] }
  0x98   : > { %1029 = vmatprep.subr.bf16.mxu1 %v1028_v9  ;;  %v360_v9 = vld [vmem:[#allocation5 + $0x5a8] sm:$0xff]  ;;  %v922_v12 = vpack.c.bf16 %v351_v4, %v347_v3  ;;  %v1050_v14 = vpack.c.bf16 %v353_v7, %v349_v5  ;;  %v1068_v3 = vpack.c.bf16 %v394_v60, %v390_v59  ;;  %v393_v4 = vld [vmem:[#allocation5 + $0x6b0] sm:$0xff]  ;;  %v398_v7 = vld [vmem:[#allocation5 + $0x6d8] sm:$0xff] }
  0x99   : > { %500 = vmatmul.mubr.f32.vlgmr.msra.gmra.mrb[0].mxu0 %v175_v15  ;;  %v396_v5 = vld [vmem:[#allocation5 + $0x6c8] sm:$0xff]  ;;  %v410_v20 = vld [vmem:[#allocation5 + $0x738] sm:$0xff]  ;;  %v411_v36 = vld [vmem:[#allocation5 + $0x740] sm:$0xff] }
  0x9a   : > { %903 = vmatpush1.bf16.msra.mxu0 %v902_v16  ;;  %642 = vmatmul.mubr.f32.vlgmr.msra.gmra.mrb[0].mxu1 %v175_v15  ;;  %v924_v15 = vpack.c.bf16 %v360_v9, %v356_v8  ;;  %v359_v16 = vld [vmem:[#allocation5 + $0x5a0] sm:$0xff]  ;;  %v402_v8 = vld [vmem:[#allocation5 + $0x6f8] sm:$0xff] }
  0x9b   : > { %1031 = vmatpush1.bf16.msra.mxu1 %v1030_v17  ;;  %905 = vmatprep.subr.bf16.mxu0 %v904_v18  ;;  %v357_v17 = vld [vmem:[#allocation5 + $0x590] sm:$0xff]  ;;  %v926_v25 = vpack.c.bf16 %v359_v16, %v355_v13  ;;  %v399_v13 = vld [vmem:[#allocation5 + $0x6e0] sm:$0xff] }
  0x9c   : > { %1033 = vmatprep.subr.bf16.mxu1 %v1032_v22  ;;  %v361_v18 = vld [vmem:[#allocation5 + $0x5b0] sm:$0xff]  ;;  %v178_v22 = vld [vmem:[%s1447_s29 + $0x18] sm:$0xff]  ;;  %v419_v48 = vld [vmem:[#allocation5 + $0x780] sm:$0xff] }
  0x9d   : > { %570 = vmatprep.mubr.f32.mxu0 %v178_v22  ;;  %712 = vmatprep.mubr.f32.mxu1 %v178_v22  ;;  %v1054_v26 = vpack.c.bf16 %v361_v18, %v357_v17  ;;  %v401_v16 = vld [vmem:[#allocation5 + $0x6f0] sm:$0xff]  ;;  %v404_v17 = vld [vmem:[#allocation5 + $0x708] sm:$0xff]  ;;  %v427_v60 = vld [vmem:[#allocation5 + $0x7c0] sm:$0xff] }
  0x9e   : > { %907 = vmatpush1.bf16.msra.mxu0 %v906_v28  ;;  %v363_v28 = vld [vmem:[#allocation5 + $0x5c0] sm:$0xff]  ;;  %v408_v18 = vld [vmem:[#allocation5 + $0x728] sm:$0xff] }
  0x9f   : > { %1035 = vmatpush1.bf16.msra.mxu1 %v1034_v29  ;;  %909 = vmatprep.subr.bf16.mxu0 %v908_v30  ;;  %v367_v29 = vld [vmem:[#allocation5 + $0x5e0] sm:$0xff]  ;;  %v365_v30 = vld [vmem:[#allocation5 + $0x5d0] sm:$0xff]  ;;  %v948_v23 = vpack.c.bf16 %v408_v18, %v404_v17 }
  0xa0   : > { %1037 = vmatprep.subr.bf16.mxu1 %v1036_v34  ;;  %v376_v34 = vld [vmem:[#allocation5 + $0x628] sm:$0xff]  ;;  %v930_v37 = vpack.c.bf16 %v367_v29, %v363_v28  ;;  %v1058_v38 = vpack.c.bf16 %v369_v32, %v365_v30  ;;  %v409_v28 = vld [vmem:[#allocation5 + $0x730] sm:$0xff]  ;;  %v418_v32 = vld [vmem:[#allocation5 + $0x778] sm:$0xff] }
  0xa1   : > { %v932_v39 = vpack.c.bf16 %v376_v34, %v372_v33  ;;  %v412_v29 = vld [vmem:[#allocation5 + $0x748] sm:$0xff] }
  0xa2   : > { %911 = vmatpush1.bf16.msra.mxu0 %v910_v40  ;;  %v371_v40 = vld [vmem:[#allocation5 + $0x600] sm:$0xff]  ;;  %v416_v30 = vld [vmem:[#allocation5 + $0x768] sm:$0xff] }
  0xa3   : > { %1039 = vmatpush1.bf16.msra.mxu1 %v1038_v41  ;;  %913 = vmatprep.subr.bf16.mxu0 %v912_v42  ;;  %v375_v41 = vld [vmem:[#allocation5 + $0x620] sm:$0xff]  ;;  %v373_v42 = vld [vmem:[#allocation5 + $0x610] sm:$0xff]  ;;  %v952_v35 = vpack.c.bf16 %v416_v30, %v412_v29 }
  0xa4   : > { %1041 = vmatprep.subr.bf16.mxu1 %v1040_v46  ;;  %v384_v46 = vld [vmem:[#allocation5 + $0x668] sm:$0xff]  ;;  %v934_v49 = vpack.c.bf16 %v375_v41, %v371_v40  ;;  %v1062_v50 = vpack.c.bf16 %v377_v44, %v373_v42  ;;  %v417_v40 = vld [vmem:[#allocation5 + $0x770] sm:$0xff]  ;;  %v426_v44 = vld [vmem:[#allocation5 + $0x7b8] sm:$0xff] }
  0xa5   : > { %v936_v51 = vpack.c.bf16 %v384_v46, %v380_v45  ;;  %v420_v41 = vld [vmem:[#allocation5 + $0x788] sm:$0xff] }
  0xa6   : > { %915 = vmatpush1.bf16.msra.mxu0 %v914_v52  ;;  %v379_v52 = vld [vmem:[#allocation5 + $0x640] sm:$0xff]  ;;  %v424_v42 = vld [vmem:[#allocation5 + $0x7a8] sm:$0xff] }
  0xa7   : > { %1043 = vmatpush1.bf16.msra.mxu1 %v1042_v53  ;;  %917 = vmatprep.subr.bf16.mxu0 %v916_v54  ;;  %v383_v53 = vld [vmem:[#allocation5 + $0x660] sm:$0xff]  ;;  %v381_v54 = vld [vmem:[#allocation5 + $0x650] sm:$0xff]  ;;  %v956_v47 = vpack.c.bf16 %v424_v42, %v420_v41 }
  0xa8   : > { %1045 = vmatprep.subr.bf16.mxu1 %v1044_v58  ;;  %v392_v58 = vld [vmem:[#allocation5 + $0x6a8] sm:$0xff]  ;;  %v938_v61 = vpack.c.bf16 %v383_v53, %v379_v52  ;;  %v1066_v62 = vpack.c.bf16 %v385_v56, %v381_v54  ;;  %v425_v52 = vld [vmem:[#allocation5 + $0x7b0] sm:$0xff]  ;;  %v434_v56 = vld [vmem:[#allocation5 + $0x7f8] sm:$0xff] }
  0xa9   : > { %v940_v63 = vpack.c.bf16 %v392_v58, %v388_v57  ;;  %v428_v53 = vld [vmem:[#allocation5 + $0x7c8] sm:$0xff] }
  0xaa   : > { %919 = vmatpush1.bf16.msra.mxu0 %v918_v0  ;;  %v387_v0 = vld [vmem:[#allocation5 + $0x680] sm:$0xff]  ;;  %v432_v54 = vld [vmem:[#allocation5 + $0x7e8] sm:$0xff] }
  0xab   : > { %1047 = vmatpush1.bf16.msra.mxu1 %v1046_v1  ;;  %921 = vmatprep.subr.bf16.mxu0 %v920_v2  ;;  %v391_v1 = vld [vmem:[#allocation5 + $0x6a0] sm:$0xff]  ;;  %v389_v2 = vld [vmem:[#allocation5 + $0x690] sm:$0xff]  ;;  %v960_v59 = vpack.c.bf16 %v432_v54, %v428_v53 }
  0xac   : > { %1049 = vmatprep.subr.bf16.mxu1 %v1048_v6  ;;  %v400_v6 = vld [vmem:[#allocation5 + $0x6e8] sm:$0xff]  ;;  %v942_v9 = vpack.c.bf16 %v391_v1, %v387_v0  ;;  %v1070_v10 = vpack.c.bf16 %v393_v4, %v389_v2  ;;  %v433_v0 = vld [vmem:[#allocation5 + $0x7f0] sm:$0xff] }
  0xad   : > { %v944_v11 = vpack.c.bf16 %v400_v6, %v396_v5 }
  0xae   : > { %923 = vmatpush1.bf16.msra.mxu0 %v922_v12  ;;  %v395_v12 = vld [vmem:[#allocation5 + $0x6c0] sm:$0xff] }
  0xaf   : > { %1051 = vmatpush1.bf16.msra.mxu1 %v1050_v14  ;;  %925 = vmatprep.subr.bf16.mxu0 %v924_v15  ;;  %v397_v14 = vld [vmem:[#allocation5 + $0x6d0] sm:$0xff]  ;;  %v1072_v15 = vpack.c.bf16 %v402_v8, %v398_v7  ;;  %v946_v21 = vpack.c.bf16 %v399_v13, %v395_v12 }
  0xb0   : > { %1053 = vmatprep.subr.bf16.mxu1 %v1052_v19  ;;  %v406_v19 = vld [vmem:[#allocation5 + $0x718] sm:$0xff]  ;;  %v1074_v22 = vpack.c.bf16 %v401_v16, %v397_v14 }
  0xb2   : > { %927 = vmatpush1.bf16.msra.mxu0 %v926_v25  ;;  %v407_v25 = vld [vmem:[#allocation5 + $0x720] sm:$0xff] }
  0xb3   : > { %1055 = vmatpush1.bf16.msra.mxu1 %v1054_v26  ;;  %929 = vmatprep.subr.bf16.mxu0 %v928_v27  ;;  %v405_v26 = vld [vmem:[#allocation5 + $0x710] sm:$0xff]  ;;  %v1076_v27 = vpack.c.bf16 %v410_v20, %v406_v19  ;;  %v950_v33 = vpack.c.bf16 %v407_v25, %v403_v24 }
  0xb4   : > { %1057 = vmatprep.subr.bf16.mxu1 %v1056_v31  ;;  %v414_v31 = vld [vmem:[#allocation5 + $0x758] sm:$0xff]  ;;  %v1078_v34 = vpack.c.bf16 %v409_v28, %v405_v26 }
  0xb6   : > { %931 = vmatpush1.bf16.msra.mxu0 %v930_v37  ;;  %v415_v37 = vld [vmem:[#allocation5 + $0x760] sm:$0xff] }
  0xb7   : > { %1059 = vmatpush1.bf16.msra.mxu1 %v1058_v38  ;;  %933 = vmatprep.subr.bf16.mxu0 %v932_v39  ;;  %v413_v38 = vld [vmem:[#allocation5 + $0x750] sm:$0xff]  ;;  %v1080_v39 = vpack.c.bf16 %v418_v32, %v414_v31  ;;  %v954_v45 = vpack.c.bf16 %v415_v37, %v411_v36 }
  0xb8   : > { %1061 = vmatprep.subr.bf16.mxu1 %v1060_v43  ;;  %v422_v43 = vld [vmem:[#allocation5 + $0x798] sm:$0xff]  ;;  %v1082_v46 = vpack.c.bf16 %v417_v40, %v413_v38 }
  0xba   : > { %935 = vmatpush1.bf16.msra.mxu0 %v934_v49  ;;  %v423_v49 = vld [vmem:[#allocation5 + $0x7a0] sm:$0xff] }
  0xbb   : > { %1063 = vmatpush1.bf16.msra.mxu1 %v1062_v50  ;;  %937 = vmatprep.subr.bf16.mxu0 %v936_v51  ;;  %v421_v50 = vld [vmem:[#allocation5 + $0x790] sm:$0xff]  ;;  %v1084_v51 = vpack.c.bf16 %v426_v44, %v422_v43  ;;  %v958_v57 = vpack.c.bf16 %v423_v49, %v419_v48 }
  0xbc   : > { %1065 = vmatprep.subr.bf16.mxu1 %v1064_v55  ;;  %v430_v55 = vld [vmem:[#allocation5 + $0x7d8] sm:$0xff]  ;;  %v1086_v58 = vpack.c.bf16 %v425_v52, %v421_v50 }
  0xbe   : > { %939 = vmatpush1.bf16.msra.mxu0 %v938_v61  ;;  %v431_v61 = vld [vmem:[#allocation5 + $0x7e0] sm:$0xff] }
  0xbf   : > { %1067 = vmatpush1.bf16.msra.mxu1 %v1066_v62  ;;  %941 = vmatprep.subr.bf16.mxu0 %v940_v63  ;;  %v1088_v62 = vpack.c.bf16 %v434_v56, %v430_v55  ;;  %v429_v63 = vld [vmem:[#allocation5 + $0x7d0] sm:$0xff]  ;;  %v962_v1 = vpack.c.bf16 %v431_v61, %v427_v60 }
  0xc0   : > { %1069 = vmatprep.subr.bf16.mxu1 %v1068_v3  ;;  %v1090_v2 = vpack.c.bf16 %v433_v0, %v429_v63  ;;  %v177_v3 = vld [vmem:[%s1447_s29 + $0x10] sm:$0xff] }
  0xc2   : > { %943 = vmatpush1.bf16.msra.mxu0 %v942_v9 }
  0xc3   : > { %1071 = vmatpush1.bf16.msra.mxu1 %v1070_v10  ;;  %945 = vmatprep.subr.bf16.mxu0 %v944_v11 }
  0xc4   : > { %1073 = vmatprep.subr.bf16.mxu1 %v1072_v15 }
  0xc6   : > { %947 = vmatpush1.bf16.msra.mxu0 %v946_v21 }
  0xc7   : > { %1075 = vmatpush1.bf16.msra.mxu1 %v1074_v22  ;;  %949 = vmatprep.subr.bf16.mxu0 %v948_v23 }
  0xc8   : > { %1077 = vmatprep.subr.bf16.mxu1 %v1076_v27 }
  0xca   : > { %951 = vmatpush1.bf16.msra.mxu0 %v950_v33 }
  0xcb   : > { %1079 = vmatpush1.bf16.msra.mxu1 %v1078_v34  ;;  %953 = vmatprep.subr.bf16.mxu0 %v952_v35 }
  0xcc   : > { %1081 = vmatprep.subr.bf16.mxu1 %v1080_v39 }
  0xce   : > { %955 = vmatpush1.bf16.msra.mxu0 %v954_v45 }
  0xcf   : > { %1083 = vmatpush1.bf16.msra.mxu1 %v1082_v46  ;;  %957 = vmatprep.subr.bf16.mxu0 %v956_v47 }
  0xd0   : > { %1085 = vmatprep.subr.bf16.mxu1 %v1084_v51 }
  0xd2   : > { %959 = vmatpush1.bf16.msra.mxu0 %v958_v57 }
  0xd3   : > { %1087 = vmatpush1.bf16.msra.mxu1 %v1086_v58  ;;  %961 = vmatprep.subr.bf16.mxu0 %v960_v59 }
  0xd4   : > { %1089 = vmatprep.subr.bf16.mxu1 %v1088_v62 }
  0xd6   : > { %963 = vmatpush1.bf16.msra.mxu0 %v962_v1 }
  0xd7   : > { %1091 = vmatpush1.bf16.msra.mxu1 %v1090_v2 }
  0xd9   : > { %571 = vmatmul.mubr.f32.vlgmr.msra.gmra.mrb[0].mxu0 %v177_v3 }
  0xda   : > { %713 = vmatmul.mubr.f32.vlgmr.msra.gmra.mrb[0].mxu1 %v177_v3 }
 0x1ac   : > { %v572_v4 = vpop.f32.mrb[0].mxu0 }
 0x1ad   : > { %719 = vst [vmem:[%s174_s15] sm:$0xff] %v572_v4  ;;  %v714_v5 = vpop.f32.mrb[0].mxu1  ;;  %v574_v6 = vpop.f32.mrb[1].mxu0 }
 0x1ae   : > { %721 = vst [vmem:[%s174_s15 + $0x10] sm:$0xff] %v714_v5  ;;  %720 = vst [vmem:[%s174_s15 + $0x8] sm:$0xff] %v574_v6  ;;  %v716_v7 = vpop.f32.mrb[1].mxu1 }
 0x1af   : > { %722 = vst [vmem:[%s174_s15 + $0x18] sm:$0xff] %v716_v7 }
 0x1b0   : > { %1226 = shalt.err (!%p1223_p7)
}
 0x1b1   : > { %s1227_s6 = scalar_lea.hbm %s1469_s28, 512  ;;  %s1231_s24 = scalar_lea.hbm %s1513_s2, 1024 }
 0x1b2   : > { %p1228_p9 = scmp.ne.s32.totalorder %s1469_s28, %s1227_s6  ;;  %p1232_p0 = scmp.lt.u32.totalorder %s1469_s28, %s1513_s2 }
 0x1b3   : > { %p1233_p11 = scmp.lt.u32.totalorder %s1231_s24, %s1227_s6  ;;  %p1235_p4 = scmp.lt.u32.totalorder %s1227_s6, %s1469_s28 }
 0x1b4   : > { %p1229_p2 = pnand %p1228_p9, %p1396_p12 }
 0x1b5   : > { %p1234_p1 = por %p1233_p11, %p1232_p0 }
 0x1b6   : > { %p1230_p5 = pneg %p1229_p2 }
 0x1b7   : > { %p1236_p6 = por %p1235_p4, %p1234_p1 }
 0x1b9   : > { %p1237_p8 = pnand %p1236_p6, %p1230_p5 }
 0x1bb   : > { %1240 = shalt.err (!%p1237_p8)
}
 0x1bc   : > { %1102 = dma.vmem_to_hbm [thread:$0]  (%p1396_p12), %s1464_s17, 512, %s1469_s28, %s724_s30  }
 0x1bd PF: > { %s750_s26 = sand.u32 1, %s1271_s9   ;;  %p1528_p10 = scmp.ne.s32.totalorder %s1518_s16, 0 }
 0x1be   : > { %p1529_p13 = scmp.ge.s32.totalorder %s1283_s12, 2  ;;  %s751_s19 = scalar_lea.sflag [#allocation4], %s750_s26 }
 0x1c0   : > { %p1113_p3 = pnand %p1529_p13, %p1528_p10 }
 0x1c2   : > { %1266 = dma.done.wait (!%p1113_p3), %s751_s19, 512  }
 0x1c3   : > { %1268 = vsyncadd (!%p1113_p3), %s751_s19, 4294966784  ;;  %p16_p7 = scmp.ge.s32.totalorder %s1361_s21, 4   ;;  %s1530_s9 = smov %s1275_s10 }
 0x1c4   : > { %s1531_s10 = smov %s1279_s11  ;;  %s1532_s11 = smov %s1392_s8 }
 0x1c5   : > { %s1533_s12 = smov %s1361_s21  ;;  %18 = sbr.rel (!%p16_p7) target bundleno = 6 (0x6), region = 77 }
 0x1cc   :  { %756 = vsyncpa [#allocation3], 1 }
 0x1cd   :  { %758 = vsyncpa [#allocation3 + $0x1], 1 }
 0x1ce   :  { %759 = vsyncpa [#allocation6], 1 }
 0x1cf   :  { %760 = vsyncpa [#allocation4], 1 }
 0x1d0   :  { %762 = vsyncpa [#allocation4 + $0x1], 1 }

</bundles_post_ra>
